<compile_context>
chip_gen: v5e
topology: v5e:2x2
jax: 0.10.0
libtpu: 0.0.40
codegen_flags: <defaults>
</compile_context>

<pallas_src>
import jax
import jax.numpy as jnp
import numpy as np
from jax.experimental import pallas as pl
from jax.experimental.pallas import tpu as pltpu


def _rope_kernel(pos_ref, inv_freq_ref, sign_ref, q_ref, k_ref, v_ref,
                 q_out_ref, k_out_ref, v_out_ref):
    """One grid step == (one batch elem, one seq tile).

    pos_ref:      (1, S_T, 1)              f32 position ids for this tile
    inv_freq_ref: (1, D)                   f32 rotary inv freqs, duplicated halves
    sign_ref:     (1, D)                   f32 [-1]*half ++ [+1]*half
    q_ref:        (1, S_T, H*D)            all query heads (native layout)
    k_ref/v_ref:  (1, S_T, KV*D)           all KV heads (native layout)
    outputs:      (1, H, S_T, D) each      (b, head, seq, dim) layout
    """
    num_heads = q_out_ref.shape[1]
    head_dim = q_out_ref.shape[3]
    num_kv = k_ref.shape[-1] // head_dim
    n_rep = num_heads // num_kv
    half = head_dim // 2
    out_dtype = q_out_ref.dtype

    pos = pos_ref[0]                       # (S_T, 1) f32
    inv_freq = inv_freq_ref[...]           # (1, D)   f32
    sign = sign_ref[...]                   # (1, D)   f32

    # cos/sin generated once per (b, seq-tile), full 128-lane width, f32 on
    # the EUP, then cast to the model dtype (matches the PyTorch reference,
    # which multiplies by cos/sin already cast to x.dtype).
    freqs = pos * inv_freq                 # (S_T, D) f32
    cos = jnp.cos(freqs).astype(out_dtype)
    sin_signed = (jnp.sin(freqs) * sign).astype(out_dtype)

    def apply_rope(x):  # x: (S_T, D) model dtype
        # rotate_half(x) == roll(x, D//2) with the sign folded into
        # sin_signed; roll runs on the XLU slot and co-issues with the VPU
        # multiplies (shift == D//2 so roll direction is irrelevant).
        return x * cos + pltpu.roll(x, half, 1) * sin_signed

    # Static unroll over heads (H small, e.g. 8..32): rotate K once per KV
    # group, fan K/V out to their n_rep output heads (repeat_kv fused into
    # the lane-dense (S_T, 128) output stores).
    for g in range(num_kv):
        k = k_ref[0, :, pl.ds(g * head_dim, head_dim)]
        v = v_ref[0, :, pl.ds(g * head_dim, head_dim)]
        k_rot = apply_rope(k)
        for r in range(n_rep):
            h = g * n_rep + r
            q = q_ref[0, :, pl.ds(h * head_dim, head_dim)]
            q_out_ref[0, h] = apply_rope(q)
            k_out_ref[0, h] = k_rot        # repeat_kv fused into the store
            v_out_ref[0, h] = v            # pure pass-through, no compute


def _vmem_capacity_bytes():
    """Physical VMEM of the current generation (conservative fallback)."""
    try:
        info = pltpu.get_tpu_info()
        cap = getattr(info, "vmem_capacity_bytes", None)
        if cap:
            return int(cap)
    except Exception:
        pass
    return 64 * 2 ** 20  # smallest across v5e/v6e/v7x


def _round_up(x, m):
    return ((x + m - 1) // m) * m


def _pick_seq_tile(seq, bytes_per_row, sublane_mult, vmem_budget, target=2048):
    """Pick (s_tile, padded_seq).

    s_tile is a multiple of `sublane_mult`, bounded so that double-buffered
    per-step blocks stay within `vmem_budget`, and capped at `target` rows.
    If seq has no clean divisor, the sequence is padded (never fall back to a
    huge untiled block).
    """
    max_rows = max(sublane_mult, (vmem_budget // 2) // max(1, bytes_per_row))
    max_rows = min(max_rows, target)
    max_rows = max(sublane_mult, (max_rows // sublane_mult) * sublane_mult)

    if seq <= max_rows:
        padded = _round_up(seq, sublane_mult)
        return padded, padded

    t = max_rows
    while t >= sublane_mult:
        if seq % t == 0:
            return t, seq
        t -= sublane_mult

    # No clean divisor: pad up to a multiple of max_rows.
    padded = _round_up(seq, max_rows)
    return max_rows, padded


def mistral_nemo_rope(query_in, key_in, value_in, position_ids, *,
                      num_heads, num_kv_heads, head_dim, rope_theta=10000.0):
    """JAX wrapper reproducing MistralNemoRope.forward semantics."""
    bsz, seq, _ = query_in.shape
    assert num_heads % num_kv_heads == 0
    assert head_dim % 2 == 0
    half = head_dim // 2
    dtype = query_in.dtype
    itemsize = jnp.dtype(dtype).itemsize

    # ---- generation-aware tiling / VMEM budget -----------------------------
    vmem_cap = _vmem_capacity_bytes()
    vmem_budget = int(vmem_cap * 0.75)       # headroom for compiler scratch
    sublane_mult = max(8, 32 // itemsize)     # 8 f32 / 16 bf16 / 32 int8-fp8
    # Bytes streamed per sequence row per step (q,k,v in + q,k,v out + pos).
    bytes_per_row = ((4 * num_heads + 2 * num_kv_heads) * head_dim) * itemsize + 4
    s_tile, padded_seq = _pick_seq_tile(seq, bytes_per_row, sublane_mult,
                                        vmem_budget)
    n_st = padded_seq // s_tile
    step_bytes = s_tile * bytes_per_row + 2 * head_dim * 4
    vmem_limit = int(min(vmem_budget,
                         max(32 * 2 ** 20, 2 * step_bytes + 4 * 2 ** 20)))

    # ---- rotary parameters (full 128-lane width, sign row folded) ----------
    inv_freq_half = 1.0 / (rope_theta ** (
        jnp.arange(0, head_dim, 2, dtype=jnp.float32) / head_dim))
    inv_freq_full = jnp.concatenate([inv_freq_half, inv_freq_half]
                                    ).reshape(1, head_dim)
    sign = jnp.concatenate([-jnp.ones((half,), jnp.float32),
                            jnp.ones((half,), jnp.float32)]).reshape(1, head_dim)
    pos = position_ids.astype(jnp.float32).reshape(bsz, seq, 1)

    # ---- pad awkward sequence lengths to a clean multiple of the tile ------
    q_in, k_in, v_in = query_in, key_in, value_in
    if padded_seq != seq:
        padw = ((0, 0), (0, padded_seq - seq), (0, 0))
        q_in = jnp.pad(q_in, padw)
        k_in = jnp.pad(k_in, padw)
        v_in = jnp.pad(v_in, padw)
        pos = jnp.pad(pos, padw)

    out_sds = jax.ShapeDtypeStruct((bsz, num_heads, padded_seq, head_dim), dtype)

    grid = (bsz, n_st)
    grid_spec = pltpu.PrefetchScalarGridSpec(
        num_scalar_prefetch=0,
        grid=grid,
        in_specs=[
            # positions for this seq tile
            pl.BlockSpec((1, s_tile, 1), lambda b, s: (b, s, 0)),
            # rotary inverse frequencies / sign row (shared)
            pl.BlockSpec((1, head_dim), lambda b, s: (0, 0)),
            pl.BlockSpec((1, head_dim), lambda b, s: (0, 0)),
            # q / k / v: full-width contiguous lane slabs in native layout
            pl.BlockSpec((1, s_tile, num_heads * head_dim),
                         lambda b, s: (b, s, 0)),
            pl.BlockSpec((1, s_tile, num_kv_heads * head_dim),
                         lambda b, s: (b, s, 0)),
            pl.BlockSpec((1, s_tile, num_kv_heads * head_dim),
                         lambda b, s: (b, s, 0)),
        ],
        out_specs=[
            pl.BlockSpec((1, num_heads, s_tile, head_dim),
                         lambda b, s: (b, 0, s, 0)),
            pl.BlockSpec((1, num_heads, s_tile, head_dim),
                         lambda b, s: (b, 0, s, 0)),
            pl.BlockSpec((1, num_heads, s_tile, head_dim),
                         lambda b, s: (b, 0, s, 0)),
        ],
    )

    q_out, k_out, v_out = pl.pallas_call(
        _rope_kernel,
        out_shape=(out_sds, out_sds, out_sds),
        grid_spec=grid_spec,
        compiler_params=pltpu.CompilerParams(
            dimension_semantics=("parallel", "parallel"),
            vmem_limit_bytes=vmem_limit),
    )(pos, inv_freq_full, sign, q_in, k_in, v_in)

    if padded_seq != seq:
        q_out = q_out[:, :, :seq, :]
        k_out = k_out[:, :, :seq, :]
        v_out = v_out[:, :, :seq, :]
    return q_out, k_out, v_out


def _reference(query_in, key_in, value_in, position_ids, *,
               num_heads, num_kv_heads, head_dim, rope_theta=10000.0):
    """Pure-JAX reference mirroring the PyTorch module."""
    bsz, seq, _ = query_in.shape
    dtype = query_in.dtype
    q = query_in.reshape(bsz, seq, num_heads, head_dim).transpose(0, 2, 1, 3)
    k = key_in.reshape(bsz, seq, num_kv_heads, head_dim).transpose(0, 2, 1, 3)
    v = value_in.reshape(bsz, seq, num_kv_heads, head_dim).transpose(0, 2, 1, 3)
    inv_freq = 1.0 / (rope_theta ** (
        jnp.arange(0, head_dim, 2, dtype=jnp.float32) / head_dim))
    freqs = position_ids.astype(jnp.float32)[:, :, None] * inv_freq[None, None, :]
    emb = jnp.concatenate([freqs, freqs], axis=-1)
    cos = jnp.cos(emb).astype(dtype)[:, None, :, :]
    sin = jnp.sin(emb).astype(dtype)[:, None, :, :]

    def rot_half(x):
        h = x.shape[-1] // 2
        return jnp.concatenate([-x[..., h:], x[..., :h]], axis=-1)

    q_emb = q * cos + rot_half(q) * sin
    k_emb = k * cos + rot_half(k) * sin
    n_rep = num_heads // num_kv_heads
    return (q_emb,
            jnp.repeat(k_emb, n_rep, axis=1),
            jnp.repeat(v, n_rep, axis=1))


if __name__ == "__main__":
    # Small config consistent with the module: hidden = heads * head_dim
    bsz, seq = 2, 8
    num_heads, num_kv_heads, head_dim = 8, 2, 128
    rope_theta = 10000.0
    dtype = jnp.float32

    key = jax.random.PRNGKey(0)
    kq, kk, kv = jax.random.split(key, 3)
    query_in = jax.random.normal(kq, (bsz, seq, num_heads * head_dim), dtype)
    key_in = jax.random.normal(kk, (bsz, seq, num_kv_heads * head_dim), dtype)
    value_in = jax.random.normal(kv, (bsz, seq, num_kv_heads * head_dim), dtype)
    position_ids = jnp.tile(jnp.arange(seq, dtype=jnp.int32)[None, :], (bsz, 1))

    q_out, k_out, v_out = mistral_nemo_rope(
        query_in, key_in, value_in, position_ids,
        num_heads=num_heads, num_kv_heads=num_kv_heads,
        head_dim=head_dim, rope_theta=rope_theta)
    jax.block_until_ready((q_out, k_out, v_out))

    q_ref, k_ref, v_ref = _reference(
        query_in, key_in, value_in, position_ids,
        num_heads=num_heads, num_kv_heads=num_kv_heads,
        head_dim=head_dim, rope_theta=rope_theta)

    np.testing.assert_allclose(np.asarray(q_out), np.asarray(q_ref),
                               rtol=1e-5, atol=1e-5)
    np.testing.assert_allclose(np.asarray(k_out), np.asarray(k_ref),
                               rtol=1e-5, atol=1e-5)
    np.testing.assert_allclose(np.asarray(v_out), np.asarray(v_ref),
                               rtol=1e-5, atol=1e-5)

    print("KERNEL_OK")
</pallas_src>

<mosaic_0001>
module attributes {stable_mosaic.version = 11 : i64} {
  func.func @_rope_kernel(%arg0: i32, %arg1: i32, %arg2: memref<1x8x1xf32, #tpu.memory_space<vmem>>, %arg3: memref<1x128xf32, #tpu.memory_space<vmem>>, %arg4: memref<1x128xf32, #tpu.memory_space<vmem>>, %arg5: memref<1x8x1024xf32, #tpu.memory_space<vmem>>, %arg6: memref<1x8x256xf32, #tpu.memory_space<vmem>>, %arg7: memref<1x8x256xf32, #tpu.memory_space<vmem>>, %arg8: memref<1x8x8x128xf32, #tpu.memory_space<vmem>>, %arg9: memref<1x8x8x128xf32, #tpu.memory_space<vmem>>, %arg10: memref<1x8x8x128xf32, #tpu.memory_space<vmem>>) attributes {dimension_semantics = [#tpu.dimension_semantics<parallel>, #tpu.dimension_semantics<parallel>], iteration_bounds = array<i64: 2, 1>, scalar_prefetch = 0 : i64, scratch_operands = 0 : i64, tpu.core_type = #tpu.core_type<tc>, window_params = [{transform_indices = @transform_0, window_bounds = array<i64: 1, 8, 1>}, {pipeline_mode = #tpu.pipeline_mode<synchronous>, transform_indices = @transform_1, window_bounds = array<i64: 1, 128>}, {pipeline_mode = #tpu.pipeline_mode<synchronous>, transform_indices = @transform_2, window_bounds = array<i64: 1, 128>}, {transform_indices = @transform_3, window_bounds = array<i64: 1, 8, 1024>}, {transform_indices = @transform_4, window_bounds = array<i64: 1, 8, 256>}, {transform_indices = @transform_5, window_bounds = array<i64: 1, 8, 256>}, {transform_indices = @transform_6, window_bounds = array<i64: 1, 8, 8, 128>}, {transform_indices = @transform_7, window_bounds = array<i64: 1, 8, 8, 128>}, {transform_indices = @transform_8, window_bounds = array<i64: 1, 8, 8, 128>}]} {
    %c0 = arith.constant 0 : index
    %c0_0 = arith.constant 0 : index
    %c0_1 = arith.constant 0 : index
    %0 = vector.load %arg2[%c0, %c0_0, %c0_1] : memref<1x8x1xf32, #tpu.memory_space<vmem>>, vector<1x8x1xf32>
    %1 = vector.shape_cast %0 : vector<1x8x1xf32> to vector<8x1xf32>
    %c0_2 = arith.constant 0 : index
    %c0_3 = arith.constant 0 : index
    %2 = vector.load %arg3[%c0_2, %c0_3] : memref<1x128xf32, #tpu.memory_space<vmem>>, vector<1x128xf32>
    %c0_4 = arith.constant 0 : index
    %c0_5 = arith.constant 0 : index
    %3 = vector.load %arg4[%c0_4, %c0_5] : memref<1x128xf32, #tpu.memory_space<vmem>>, vector<1x128xf32>
    %4 = vector.broadcast %1 : vector<8x1xf32> to vector<8x128xf32>
    %5 = vector.broadcast %2 : vector<1x128xf32> to vector<8x128xf32>
    %6 = arith.mulf %4, %5 : vector<8x128xf32>
    %7 = math.cos %6 : vector<8x128xf32>
    %8 = math.sin %6 : vector<8x128xf32>
    %9 = vector.broadcast %3 : vector<1x128xf32> to vector<8x128xf32>
    %10 = arith.mulf %8, %9 : vector<8x128xf32>
    %c0_6 = arith.constant 0 : index
    %c0_7 = arith.constant 0 : index
    %c0_8 = arith.constant 0 : index
    %11 = vector.load %arg6[%c0_6, %c0_7, %c0_8] : memref<1x8x256xf32, #tpu.memory_space<vmem>>, vector<1x8x128xf32>
    %12 = vector.shape_cast %11 : vector<1x8x128xf32> to vector<8x128xf32>
    %c0_9 = arith.constant 0 : index
    %c0_10 = arith.constant 0 : index
    %c0_11 = arith.constant 0 : index
    %13 = vector.load %arg7[%c0_9, %c0_10, %c0_11] : memref<1x8x256xf32, #tpu.memory_space<vmem>>, vector<1x8x128xf32>
    %14 = vector.shape_cast %13 : vector<1x8x128xf32> to vector<8x128xf32>
    %15 = arith.mulf %12, %7 : vector<8x128xf32>
    %c64_i32 = arith.constant 64 : i32
    %16 = tpu.dynamic_rotate %12 by %c64_i32 dim 1 : vector<8x128xf32>, i32 -> vector<8x128xf32>
    %17 = arith.mulf %16, %10 : vector<8x128xf32>
    %18 = arith.addf %15, %17 : vector<8x128xf32>
    %c0_12 = arith.constant 0 : index
    %c0_13 = arith.constant 0 : index
    %c0_14 = arith.constant 0 : index
    %19 = vector.load %arg5[%c0_12, %c0_13, %c0_14] : memref<1x8x1024xf32, #tpu.memory_space<vmem>>, vector<1x8x128xf32>
    %20 = vector.shape_cast %19 : vector<1x8x128xf32> to vector<8x128xf32>
    %21 = arith.mulf %20, %7 : vector<8x128xf32>
    %c64_i32_15 = arith.constant 64 : i32
    %22 = tpu.dynamic_rotate %20 by %c64_i32_15 dim 1 : vector<8x128xf32>, i32 -> vector<8x128xf32>
    %23 = arith.mulf %22, %10 : vector<8x128xf32>
    %24 = arith.addf %21, %23 : vector<8x128xf32>
    %c0_16 = arith.constant 0 : index
    %c0_17 = arith.constant 0 : index
    %c0_18 = arith.constant 0 : index
    %c0_19 = arith.constant 0 : index
    %25 = vector.load %arg8[%c0_16, %c0_17, %c0_18, %c0_19] : memref<1x8x8x128xf32, #tpu.memory_space<vmem>>, vector<1x1x8x128xf32>
    %26 = vector.shape_cast %25 : vector<1x1x8x128xf32> to vector<8x128xf32>
    %27 = vector.shape_cast %24 : vector<8x128xf32> to vector<1x1x8x128xf32>
    tpu.vector_store %arg8[%c0_16, %c0_17, %c0_18, %c0_19], %27 {strides = array<i32>} : memref<1x8x8x128xf32, #tpu.memory_space<vmem>>, vector<1x1x8x128xf32>,
    %c0_20 = arith.constant 0 : index
    %c0_21 = arith.constant 0 : index
    %c0_22 = arith.constant 0 : index
    %c0_23 = arith.constant 0 : index
    %28 = vector.load %arg9[%c0_20, %c0_21, %c0_22, %c0_23] : memref<1x8x8x128xf32, #tpu.memory_space<vmem>>, vector<1x1x8x128xf32>
    %29 = vector.shape_cast %28 : vector<1x1x8x128xf32> to vector<8x128xf32>
    %30 = vector.shape_cast %18 : vector<8x128xf32> to vector<1x1x8x128xf32>
    tpu.vector_store %arg9[%c0_20, %c0_21, %c0_22, %c0_23], %30 {strides = array<i32>} : memref<1x8x8x128xf32, #tpu.memory_space<vmem>>, vector<1x1x8x128xf32>,
    %c0_24 = arith.constant 0 : index
    %c0_25 = arith.constant 0 : index
    %c0_26 = arith.constant 0 : index
    %c0_27 = arith.constant 0 : index
    %31 = vector.load %arg10[%c0_24, %c0_25, %c0_26, %c0_27] : memref<1x8x8x128xf32, #tpu.memory_space<vmem>>, vector<1x1x8x128xf32>
    %32 = vector.shape_cast %31 : vector<1x1x8x128xf32> to vector<8x128xf32>
    %33 = vector.shape_cast %14 : vector<8x128xf32> to vector<1x1x8x128xf32>
    tpu.vector_store %arg10[%c0_24, %c0_25, %c0_26, %c0_27], %33 {strides = array<i32>} : memref<1x8x8x128xf32, #tpu.memory_space<vmem>>, vector<1x1x8x128xf32>,
    %c0_28 = arith.constant 0 : index
    %c0_29 = arith.constant 0 : index
    %c128 = arith.constant 128 : index
    %34 = vector.load %arg5[%c0_28, %c0_29, %c128] : memref<1x8x1024xf32, #tpu.memory_space<vmem>>, vector<1x8x128xf32>
    %35 = vector.shape_cast %34 : vector<1x8x128xf32> to vector<8x128xf32>
    %36 = arith.mulf %35, %7 : vector<8x128xf32>
    %c64_i32_30 = arith.constant 64 : i32
    %37 = tpu.dynamic_rotate %35 by %c64_i32_30 dim 1 : vector<8x128xf32>, i32 -> vector<8x128xf32>
    %38 = arith.mulf %37, %10 : vector<8x128xf32>
    %39 = arith.addf %36, %38 : vector<8x128xf32>
    %c0_31 = arith.constant 0 : index
    %c1 = arith.constant 1 : index
    %c0_32 = arith.constant 0 : index
    %c0_33 = arith.constant 0 : index
    %40 = vector.load %arg8[%c0_31, %c1, %c0_32, %c0_33] : memref<1x8x8x128xf32, #tpu.memory_space<vmem>>, vector<1x1x8x128xf32>
    %41 = vector.shape_cast %40 : vector<1x1x8x128xf32> to vector<8x128xf32>
    %42 = vector.shape_cast %39 : vector<8x128xf32> to vector<1x1x8x128xf32>
    tpu.vector_store %arg8[%c0_31, %c1, %c0_32, %c0_33], %42 {strides = array<i32>} : memref<1x8x8x128xf32, #tpu.memory_space<vmem>>, vector<1x1x8x128xf32>,
    %c0_34 = arith.constant 0 : index
    %c1_35 = arith.constant 1 : index
    %c0_36 = arith.constant 0 : index
    %c0_37 = arith.constant 0 : index
    %43 = vector.load %arg9[%c0_34, %c1_35, %c0_36, %c0_37] : memref<1x8x8x128xf32, #tpu.memory_space<vmem>>, vector<1x1x8x128xf32>
    %44 = vector.shape_cast %43 : vector<1x1x8x128xf32> to vector<8x128xf32>
    %45 = vector.shape_cast %18 : vector<8x128xf32> to vector<1x1x8x128xf32>
    tpu.vector_store %arg9[%c0_34, %c1_35, %c0_36, %c0_37], %45 {strides = array<i32>} : memref<1x8x8x128xf32, #tpu.memory_space<vmem>>, vector<1x1x8x128xf32>,
    %c0_38 = arith.constant 0 : index
    %c1_39 = arith.constant 1 : index
    %c0_40 = arith.constant 0 : index
    %c0_41 = arith.constant 0 : index
    %46 = vector.load %arg10[%c0_38, %c1_39, %c0_40, %c0_41] : memref<1x8x8x128xf32, #tpu.memory_space<vmem>>, vector<1x1x8x128xf32>
    %47 = vector.shape_cast %46 : vector<1x1x8x128xf32> to vector<8x128xf32>
    %48 = vector.shape_cast %14 : vector<8x128xf32> to vector<1x1x8x128xf32>
    tpu.vector_store %arg10[%c0_38, %c1_39, %c0_40, %c0_41], %48 {strides = array<i32>} : memref<1x8x8x128xf32, #tpu.memory_space<vmem>>, vector<1x1x8x128xf32>,
    %c0_42 = arith.constant 0 : index
    %c0_43 = arith.constant 0 : index
    %c256 = arith.constant 256 : index
    %49 = vector.load %arg5[%c0_42, %c0_43, %c256] : memref<1x8x1024xf32, #tpu.memory_space<vmem>>, vector<1x8x128xf32>
    %50 = vector.shape_cast %49 : vector<1x8x128xf32> to vector<8x128xf32>
    %51 = arith.mulf %50, %7 : vector<8x128xf32>
    %c64_i32_44 = arith.constant 64 : i32
    %52 = tpu.dynamic_rotate %50 by %c64_i32_44 dim 1 : vector<8x128xf32>, i32 -> vector<8x128xf32>
    %53 = arith.mulf %52, %10 : vector<8x128xf32>
    %54 = arith.addf %51, %53 : vector<8x128xf32>
    %c0_45 = arith.constant 0 : index
    %c2 = arith.constant 2 : index
    %c0_46 = arith.constant 0 : index
    %c0_47 = arith.constant 0 : index
    %55 = vector.load %arg8[%c0_45, %c2, %c0_46, %c0_47] : memref<1x8x8x128xf32, #tpu.memory_space<vmem>>, vector<1x1x8x128xf32>
    %56 = vector.shape_cast %55 : vector<1x1x8x128xf32> to vector<8x128xf32>
    %57 = vector.shape_cast %54 : vector<8x128xf32> to vector<1x1x8x128xf32>
    tpu.vector_store %arg8[%c0_45, %c2, %c0_46, %c0_47], %57 {strides = array<i32>} : memref<1x8x8x128xf32, #tpu.memory_space<vmem>>, vector<1x1x8x128xf32>,
    %c0_48 = arith.constant 0 : index
    %c2_49 = arith.constant 2 : index
    %c0_50 = arith.constant 0 : index
    %c0_51 = arith.constant 0 : index
    %58 = vector.load %arg9[%c0_48, %c2_49, %c0_50, %c0_51] : memref<1x8x8x128xf32, #tpu.memory_space<vmem>>, vector<1x1x8x128xf32>
    %59 = vector.shape_cast %58 : vector<1x1x8x128xf32> to vector<8x128xf32>
    %60 = vector.shape_cast %18 : vector<8x128xf32> to vector<1x1x8x128xf32>
    tpu.vector_store %arg9[%c0_48, %c2_49, %c0_50, %c0_51], %60 {strides = array<i32>} : memref<1x8x8x128xf32, #tpu.memory_space<vmem>>, vector<1x1x8x128xf32>,
    %c0_52 = arith.constant 0 : index
    %c2_53 = arith.constant 2 : index
    %c0_54 = arith.constant 0 : index
    %c0_55 = arith.constant 0 : index
    %61 = vector.load %arg10[%c0_52, %c2_53, %c0_54, %c0_55] : memref<1x8x8x128xf32, #tpu.memory_space<vmem>>, vector<1x1x8x128xf32>
    %62 = vector.shape_cast %61 : vector<1x1x8x128xf32> to vector<8x128xf32>
    %63 = vector.shape_cast %14 : vector<8x128xf32> to vector<1x1x8x128xf32>
    tpu.vector_store %arg10[%c0_52, %c2_53, %c0_54, %c0_55], %63 {strides = array<i32>} : memref<1x8x8x128xf32, #tpu.memory_space<vmem>>, vector<1x1x8x128xf32>,
    %c0_56 = arith.constant 0 : index
    %c0_57 = arith.constant 0 : index
    %c384 = arith.constant 384 : index
    %64 = vector.load %arg5[%c0_56, %c0_57, %c384] : memref<1x8x1024xf32, #tpu.memory_space<vmem>>, vector<1x8x128xf32>
    %65 = vector.shape_cast %64 : vector<1x8x128xf32> to vector<8x128xf32>
    %66 = arith.mulf %65, %7 : vector<8x128xf32>
    %c64_i32_58 = arith.constant 64 : i32
    %67 = tpu.dynamic_rotate %65 by %c64_i32_58 dim 1 : vector<8x128xf32>, i32 -> vector<8x128xf32>
    %68 = arith.mulf %67, %10 : vector<8x128xf32>
    %69 = arith.addf %66, %68 : vector<8x128xf32>
    %c0_59 = arith.constant 0 : index
    %c3 = arith.constant 3 : index
    %c0_60 = arith.constant 0 : index
    %c0_61 = arith.constant 0 : index
    %70 = vector.load %arg8[%c0_59, %c3, %c0_60, %c0_61] : memref<1x8x8x128xf32, #tpu.memory_space<vmem>>, vector<1x1x8x128xf32>
    %71 = vector.shape_cast %70 : vector<1x1x8x128xf32> to vector<8x128xf32>
    %72 = vector.shape_cast %69 : vector<8x128xf32> to vector<1x1x8x128xf32>
    tpu.vector_store %arg8[%c0_59, %c3, %c0_60, %c0_61], %72 {strides = array<i32>} : memref<1x8x8x128xf32, #tpu.memory_space<vmem>>, vector<1x1x8x128xf32>,
    %c0_62 = arith.constant 0 : index
    %c3_63 = arith.constant 3 : index
    %c0_64 = arith.constant 0 : index
    %c0_65 = arith.constant 0 : index
    %73 = vector.load %arg9[%c0_62, %c3_63, %c0_64, %c0_65] : memref<1x8x8x128xf32, #tpu.memory_space<vmem>>, vector<1x1x8x128xf32>
    %74 = vector.shape_cast %73 : vector<1x1x8x128xf32> to vector<8x128xf32>
    %75 = vector.shape_cast %18 : vector<8x128xf32> to vector<1x1x8x128xf32>
    tpu.vector_store %arg9[%c0_62, %c3_63, %c0_64, %c0_65], %75 {strides = array<i32>} : memref<1x8x8x128xf32, #tpu.memory_space<vmem>>, vector<1x1x8x128xf32>,
    %c0_66 = arith.constant 0 : index
    %c3_67 = arith.constant 3 : index
    %c0_68 = arith.constant 0 : index
    %c0_69 = arith.constant 0 : index
    %76 = vector.load %arg10[%c0_66, %c3_67, %c0_68, %c0_69] : memref<1x8x8x128xf32, #tpu.memory_space<vmem>>, vector<1x1x8x128xf32>
    %77 = vector.shape_cast %76 : vector<1x1x8x128xf32> to vector<8x128xf32>
    %78 = vector.shape_cast %14 : vector<8x128xf32> to vector<1x1x8x128xf32>
    tpu.vector_store %arg10[%c0_66, %c3_67, %c0_68, %c0_69], %78 {strides = array<i32>} : memref<1x8x8x128xf32, #tpu.memory_space<vmem>>, vector<1x1x8x128xf32>,
    %c0_70 = arith.constant 0 : index
    %c0_71 = arith.constant 0 : index
    %c128_72 = arith.constant 128 : index
    %79 = vector.load %arg6[%c0_70, %c0_71, %c128_72] : memref<1x8x256xf32, #tpu.memory_space<vmem>>, vector<1x8x128xf32>
    %80 = vector.shape_cast %79 : vector<1x8x128xf32> to vector<8x128xf32>
    %c0_73 = arith.constant 0 : index
    %c0_74 = arith.constant 0 : index
    %c128_75 = arith.constant 128 : index
    %81 = vector.load %arg7[%c0_73, %c0_74, %c128_75] : memref<1x8x256xf32, #tpu.memory_space<vmem>>, vector<1x8x128xf32>
    %82 = vector.shape_cast %81 : vector<1x8x128xf32> to vector<8x128xf32>
    %83 = arith.mulf %80, %7 : vector<8x128xf32>
    %c64_i32_76 = arith.constant 64 : i32
    %84 = tpu.dynamic_rotate %80 by %c64_i32_76 dim 1 : vector<8x128xf32>, i32 -> vector<8x128xf32>
    %85 = arith.mulf %84, %10 : vector<8x128xf32>
    %86 = arith.addf %83, %85 : vector<8x128xf32>
    %c0_77 = arith.constant 0 : index
    %c0_78 = arith.constant 0 : index
    %c512 = arith.constant 512 : index
    %87 = vector.load %arg5[%c0_77, %c0_78, %c512] : memref<1x8x1024xf32, #tpu.memory_space<vmem>>, vector<1x8x128xf32>
    %88 = vector.shape_cast %87 : vector<1x8x128xf32> to vector<8x128xf32>
    %89 = arith.mulf %88, %7 : vector<8x128xf32>
    %c64_i32_79 = arith.constant 64 : i32
    %90 = tpu.dynamic_rotate %88 by %c64_i32_79 dim 1 : vector<8x128xf32>, i32 -> vector<8x128xf32>
    %91 = arith.mulf %90, %10 : vector<8x128xf32>
    %92 = arith.addf %89, %91 : vector<8x128xf32>
    %c0_80 = arith.constant 0 : index
    %c4 = arith.constant 4 : index
    %c0_81 = arith.constant 0 : index
    %c0_82 = arith.constant 0 : index
    %93 = vector.load %arg8[%c0_80, %c4, %c0_81, %c0_82] : memref<1x8x8x128xf32, #tpu.memory_space<vmem>>, vector<1x1x8x128xf32>
    %94 = vector.shape_cast %93 : vector<1x1x8x128xf32> to vector<8x128xf32>
    %95 = vector.shape_cast %92 : vector<8x128xf32> to vector<1x1x8x128xf32>
    tpu.vector_store %arg8[%c0_80, %c4, %c0_81, %c0_82], %95 {strides = array<i32>} : memref<1x8x8x128xf32, #tpu.memory_space<vmem>>, vector<1x1x8x128xf32>,
    %c0_83 = arith.constant 0 : index
    %c4_84 = arith.constant 4 : index
    %c0_85 = arith.constant 0 : index
    %c0_86 = arith.constant 0 : index
    %96 = vector.load %arg9[%c0_83, %c4_84, %c0_85, %c0_86] : memref<1x8x8x128xf32, #tpu.memory_space<vmem>>, vector<1x1x8x128xf32>
    %97 = vector.shape_cast %96 : vector<1x1x8x128xf32> to vector<8x128xf32>
    %98 = vector.shape_cast %86 : vector<8x128xf32> to vector<1x1x8x128xf32>
    tpu.vector_store %arg9[%c0_83, %c4_84, %c0_85, %c0_86], %98 {strides = array<i32>} : memref<1x8x8x128xf32, #tpu.memory_space<vmem>>, vector<1x1x8x128xf32>,
    %c0_87 = arith.constant 0 : index
    %c4_88 = arith.constant 4 : index
    %c0_89 = arith.constant 0 : index
    %c0_90 = arith.constant 0 : index
    %99 = vector.load %arg10[%c0_87, %c4_88, %c0_89, %c0_90] : memref<1x8x8x128xf32, #tpu.memory_space<vmem>>, vector<1x1x8x128xf32>
    %100 = vector.shape_cast %99 : vector<1x1x8x128xf32> to vector<8x128xf32>
    %101 = vector.shape_cast %82 : vector<8x128xf32> to vector<1x1x8x128xf32>
    tpu.vector_store %arg10[%c0_87, %c4_88, %c0_89, %c0_90], %101 {strides = array<i32>} : memref<1x8x8x128xf32, #tpu.memory_space<vmem>>, vector<1x1x8x128xf32>,
    %c0_91 = arith.constant 0 : index
    %c0_92 = arith.constant 0 : index
    %c640 = arith.constant 640 : index
    %102 = vector.load %arg5[%c0_91, %c0_92, %c640] : memref<1x8x1024xf32, #tpu.memory_space<vmem>>, vector<1x8x128xf32>
    %103 = vector.shape_cast %102 : vector<1x8x128xf32> to vector<8x128xf32>
    %104 = arith.mulf %103, %7 : vector<8x128xf32>
    %c64_i32_93 = arith.constant 64 : i32
    %105 = tpu.dynamic_rotate %103 by %c64_i32_93 dim 1 : vector<8x128xf32>, i32 -> vector<8x128xf32>
    %106 = arith.mulf %105, %10 : vector<8x128xf32>
    %107 = arith.addf %104, %106 : vector<8x128xf32>
    %c0_94 = arith.constant 0 : index
    %c5 = arith.constant 5 : index
    %c0_95 = arith.constant 0 : index
    %c0_96 = arith.constant 0 : index
    %108 = vector.load %arg8[%c0_94, %c5, %c0_95, %c0_96] : memref<1x8x8x128xf32, #tpu.memory_space<vmem>>, vector<1x1x8x128xf32>
    %109 = vector.shape_cast %108 : vector<1x1x8x128xf32> to vector<8x128xf32>
    %110 = vector.shape_cast %107 : vector<8x128xf32> to vector<1x1x8x128xf32>
    tpu.vector_store %arg8[%c0_94, %c5, %c0_95, %c0_96], %110 {strides = array<i32>} : memref<1x8x8x128xf32, #tpu.memory_space<vmem>>, vector<1x1x8x128xf32>,
    %c0_97 = arith.constant 0 : index
    %c5_98 = arith.constant 5 : index
    %c0_99 = arith.constant 0 : index
    %c0_100 = arith.constant 0 : index
    %111 = vector.load %arg9[%c0_97, %c5_98, %c0_99, %c0_100] : memref<1x8x8x128xf32, #tpu.memory_space<vmem>>, vector<1x1x8x128xf32>
    %112 = vector.shape_cast %111 : vector<1x1x8x128xf32> to vector<8x128xf32>
    %113 = vector.shape_cast %86 : vector<8x128xf32> to vector<1x1x8x128xf32>
    tpu.vector_store %arg9[%c0_97, %c5_98, %c0_99, %c0_100], %113 {strides = array<i32>} : memref<1x8x8x128xf32, #tpu.memory_space<vmem>>, vector<1x1x8x128xf32>,
    %c0_101 = arith.constant 0 : index
    %c5_102 = arith.constant 5 : index
    %c0_103 = arith.constant 0 : index
    %c0_104 = arith.constant 0 : index
    %114 = vector.load %arg10[%c0_101, %c5_102, %c0_103, %c0_104] : memref<1x8x8x128xf32, #tpu.memory_space<vmem>>, vector<1x1x8x128xf32>
    %115 = vector.shape_cast %114 : vector<1x1x8x128xf32> to vector<8x128xf32>
    %116 = vector.shape_cast %82 : vector<8x128xf32> to vector<1x1x8x128xf32>
    tpu.vector_store %arg10[%c0_101, %c5_102, %c0_103, %c0_104], %116 {strides = array<i32>} : memref<1x8x8x128xf32, #tpu.memory_space<vmem>>, vector<1x1x8x128xf32>,
    %c0_105 = arith.constant 0 : index
    %c0_106 = arith.constant 0 : index
    %c768 = arith.constant 768 : index
    %117 = vector.load %arg5[%c0_105, %c0_106, %c768] : memref<1x8x1024xf32, #tpu.memory_space<vmem>>, vector<1x8x128xf32>
    %118 = vector.shape_cast %117 : vector<1x8x128xf32> to vector<8x128xf32>
    %119 = arith.mulf %118, %7 : vector<8x128xf32>
    %c64_i32_107 = arith.constant 64 : i32
    %120 = tpu.dynamic_rotate %118 by %c64_i32_107 dim 1 : vector<8x128xf32>, i32 -> vector<8x128xf32>
    %121 = arith.mulf %120, %10 : vector<8x128xf32>
    %122 = arith.addf %119, %121 : vector<8x128xf32>
    %c0_108 = arith.constant 0 : index
    %c6 = arith.constant 6 : index
    %c0_109 = arith.constant 0 : index
    %c0_110 = arith.constant 0 : index
    %123 = vector.load %arg8[%c0_108, %c6, %c0_109, %c0_110] : memref<1x8x8x128xf32, #tpu.memory_space<vmem>>, vector<1x1x8x128xf32>
    %124 = vector.shape_cast %123 : vector<1x1x8x128xf32> to vector<8x128xf32>
    %125 = vector.shape_cast %122 : vector<8x128xf32> to vector<1x1x8x128xf32>
    tpu.vector_store %arg8[%c0_108, %c6, %c0_109, %c0_110], %125 {strides = array<i32>} : memref<1x8x8x128xf32, #tpu.memory_space<vmem>>, vector<1x1x8x128xf32>,
    %c0_111 = arith.constant 0 : index
    %c6_112 = arith.constant 6 : index
    %c0_113 = arith.constant 0 : index
    %c0_114 = arith.constant 0 : index
    %126 = vector.load %arg9[%c0_111, %c6_112, %c0_113, %c0_114] : memref<1x8x8x128xf32, #tpu.memory_space<vmem>>, vector<1x1x8x128xf32>
    %127 = vector.shape_cast %126 : vector<1x1x8x128xf32> to vector<8x128xf32>
    %128 = vector.shape_cast %86 : vector<8x128xf32> to vector<1x1x8x128xf32>
    tpu.vector_store %arg9[%c0_111, %c6_112, %c0_113, %c0_114], %128 {strides = array<i32>} : memref<1x8x8x128xf32, #tpu.memory_space<vmem>>, vector<1x1x8x128xf32>,
    %c0_115 = arith.constant 0 : index
    %c6_116 = arith.constant 6 : index
    %c0_117 = arith.constant 0 : index
    %c0_118 = arith.constant 0 : index
    %129 = vector.load %arg10[%c0_115, %c6_116, %c0_117, %c0_118] : memref<1x8x8x128xf32, #tpu.memory_space<vmem>>, vector<1x1x8x128xf32>
    %130 = vector.shape_cast %129 : vector<1x1x8x128xf32> to vector<8x128xf32>
    %131 = vector.shape_cast %82 : vector<8x128xf32> to vector<1x1x8x128xf32>
    tpu.vector_store %arg10[%c0_115, %c6_116, %c0_117, %c0_118], %131 {strides = array<i32>} : memref<1x8x8x128xf32, #tpu.memory_space<vmem>>, vector<1x1x8x128xf32>,
    %c0_119 = arith.constant 0 : index
    %c0_120 = arith.constant 0 : index
    %c896 = arith.constant 896 : index
    %132 = vector.load %arg5[%c0_119, %c0_120, %c896] : memref<1x8x1024xf32, #tpu.memory_space<vmem>>, vector<1x8x128xf32>
    %133 = vector.shape_cast %132 : vector<1x8x128xf32> to vector<8x128xf32>
    %134 = arith.mulf %133, %7 : vector<8x128xf32>
    %c64_i32_121 = arith.constant 64 : i32
    %135 = tpu.dynamic_rotate %133 by %c64_i32_121 dim 1 : vector<8x128xf32>, i32 -> vector<8x128xf32>
    %136 = arith.mulf %135, %10 : vector<8x128xf32>
    %137 = arith.addf %134, %136 : vector<8x128xf32>
    %c0_122 = arith.constant 0 : index
    %c7 = arith.constant 7 : index
    %c0_123 = arith.constant 0 : index
    %c0_124 = arith.constant 0 : index
    %138 = vector.load %arg8[%c0_122, %c7, %c0_123, %c0_124] : memref<1x8x8x128xf32, #tpu.memory_space<vmem>>, vector<1x1x8x128xf32>
    %139 = vector.shape_cast %138 : vector<1x1x8x128xf32> to vector<8x128xf32>
    %140 = vector.shape_cast %137 : vector<8x128xf32> to vector<1x1x8x128xf32>
    tpu.vector_store %arg8[%c0_122, %c7, %c0_123, %c0_124], %140 {strides = array<i32>} : memref<1x8x8x128xf32, #tpu.memory_space<vmem>>, vector<1x1x8x128xf32>,
    %c0_125 = arith.constant 0 : index
    %c7_126 = arith.constant 7 : index
    %c0_127 = arith.constant 0 : index
    %c0_128 = arith.constant 0 : index
    %141 = vector.load %arg9[%c0_125, %c7_126, %c0_127, %c0_128] : memref<1x8x8x128xf32, #tpu.memory_space<vmem>>, vector<1x1x8x128xf32>
    %142 = vector.shape_cast %141 : vector<1x1x8x128xf32> to vector<8x128xf32>
    %143 = vector.shape_cast %86 : vector<8x128xf32> to vector<1x1x8x128xf32>
    tpu.vector_store %arg9[%c0_125, %c7_126, %c0_127, %c0_128], %143 {strides = array<i32>} : memref<1x8x8x128xf32, #tpu.memory_space<vmem>>, vector<1x1x8x128xf32>,
    %c0_129 = arith.constant 0 : index
    %c7_130 = arith.constant 7 : index
    %c0_131 = arith.constant 0 : index
    %c0_132 = arith.constant 0 : index
    %144 = vector.load %arg10[%c0_129, %c7_130, %c0_131, %c0_132] : memref<1x8x8x128xf32, #tpu.memory_space<vmem>>, vector<1x1x8x128xf32>
    %145 = vector.shape_cast %144 : vector<1x1x8x128xf32> to vector<8x128xf32>
    %146 = vector.shape_cast %82 : vector<8x128xf32> to vector<1x1x8x128xf32>
    tpu.vector_store %arg10[%c0_129, %c7_130, %c0_131, %c0_132], %146 {strides = array<i32>} : memref<1x8x8x128xf32, #tpu.memory_space<vmem>>, vector<1x1x8x128xf32>,
    return
  }
  func.func @transform_0(%arg0: i32, %arg1: i32) -> (i32, i32, i32) {
    %c0_i32 = arith.constant 0 : i32
    %c0_i32_0 = arith.constant 0 : i32
    return %arg0, %arg1, %c0_i32 : i32, i32, i32
  }
  func.func @transform_1(%arg0: i32, %arg1: i32) -> (i32, i32) {
    %c0_i32 = arith.constant 0 : i32
    %c0_i32_0 = arith.constant 0 : i32
    %c0_i32_1 = arith.constant 0 : i32
    return %c0_i32, %c0_i32_0 : i32, i32
  }
  func.func @transform_2(%arg0: i32, %arg1: i32) -> (i32, i32) {
    %c0_i32 = arith.constant 0 : i32
    %c0_i32_0 = arith.constant 0 : i32
    %c0_i32_1 = arith.constant 0 : i32
    return %c0_i32, %c0_i32_0 : i32, i32
  }
  func.func @transform_3(%arg0: i32, %arg1: i32) -> (i32, i32, i32) {
    %c0_i32 = arith.constant 0 : i32
    %c0_i32_0 = arith.constant 0 : i32
    return %arg0, %arg1, %c0_i32 : i32, i32, i32
  }
  func.func @transform_4(%arg0: i32, %arg1: i32) -> (i32, i32, i32) {
    %c0_i32 = arith.constant 0 : i32
    %c0_i32_0 = arith.constant 0 : i32
    return %arg0, %arg1, %c0_i32 : i32, i32, i32
  }
  func.func @transform_5(%arg0: i32, %arg1: i32) -> (i32, i32, i32) {
    %c0_i32 = arith.constant 0 : i32
    %c0_i32_0 = arith.constant 0 : i32
    return %arg0, %arg1, %c0_i32 : i32, i32, i32
  }
  func.func @transform_6(%arg0: i32, %arg1: i32) -> (i32, i32, i32, i32) {
    %c0_i32 = arith.constant 0 : i32
    %c0_i32_0 = arith.constant 0 : i32
    %c0_i32_1 = arith.constant 0 : i32
    return %arg0, %c0_i32, %arg1, %c0_i32_0 : i32, i32, i32, i32
  }
  func.func @transform_7(%arg0: i32, %arg1: i32) -> (i32, i32, i32, i32) {
    %c0_i32 = arith.constant 0 : i32
    %c0_i32_0 = arith.constant 0 : i32
    %c0_i32_1 = arith.constant 0 : i32
    return %arg0, %c0_i32, %arg1, %c0_i32_0 : i32, i32, i32, i32
  }
  func.func @transform_8(%arg0: i32, %arg1: i32) -> (i32, i32, i32, i32) {
    %c0_i32 = arith.constant 0 : i32
    %c0_i32_0 = arith.constant 0 : i32
    %c0_i32_1 = arith.constant 0 : i32
    return %arg0, %c0_i32, %arg1, %c0_i32_0 : i32, i32, i32, i32
  }
}

</mosaic_0001>

<bundles_post_ra>
// kernel: tpu_custom_call.1
= control target key start
LH: loop header
LB: loop body
LE: loop exit
PB: predicated region body
PF: predicated region fallthrough
CT: control target
= control target key end

     0   :  { %s2036_s0 = inlined_call_operand.vmem [shape: f32[2,8,1], index: 0, kind: input, shape index: {}]   ;;  %s2037_s1 = inlined_call_operand.vmem [shape: f32[1,128], index: 1, kind: input, shape index: {}]   ;;  %s2038_s2 = inlined_call_operand.vmem [shape: f32[1,128], index: 2, kind: input, shape index: {}]   ;;  %s2039_s3 = inlined_call_operand.hbm [shape: f32[2,8,1024], index: 3, kind: input, shape index: {}]   ;;  %s2040_s4 = inlined_call_operand.hbm [shape: f32[2,8,256], index: 4, kind: input, shape index: {}]   ;;  %s2041_s5 = inlined_call_operand.hbm [shape: f32[2,8,256], index: 5, kind: input, shape index: {}]   ;;  %s2042_s6 = inlined_call_operand.hbm [shape: f32[2,8,8,128], index: 6, kind: output, shape index: {0}]   ;;  %s2043_s7 = inlined_call_operand.hbm [shape: f32[2,8,8,128], index: 7, kind: output, shape index: {1}]   ;;  %s2044_s8 = inlined_call_operand.hbm [shape: f32[2,8,8,128], index: 8, kind: output, shape index: {2}]  }
   0x1   :  { %2053 = sst [smem:[#allocation22_spill]] %s2040_s4 }
   0x2   :  { %2054 = sst [smem:[#allocation23_spill]] %s2044_s8 }
   0x3   :  { %14 = vsyncpa [#allocation3], 0 }
   0x4   :  { %16 = vsyncpa [#allocation3 + $0x1], 0 }
   0x5   :  { %17 = vsyncpa [#allocation6], 0 }
   0x6   :  { %19 = vsyncpa [#allocation6 + $0x1], 0 }
   0x7   :  { %20 = vsyncpa [#allocation4], 0 }
   0x8   :  { %22 = vsyncpa [#allocation4 + $0x1], 0 }
   0x9   :  { %23 = vsyncpa [#allocation10], 0 }
   0xa   :  { %25 = vsyncpa [#allocation10 + $0x1], 0  ;;  %s1642_s27 = smov 0   ;;  %s1644_s28 = smov 0  }
   0xb   :  { %s1646_s29 = smov 0   ;;  %s1648_s30 = smov 0  }
   0xc   :  { %s1650_s9 = smov 0   ;;  %s1652_s10 = smov 0  }
   0xd LB: > { %2055 = sst [smem:[#allocation16_spill]] %s1565_s27  ;;  %s1673_s11 = sadd.s32 4294967295, %s1585_s10   ;;  %s1585_s10 = sphi %s1652_s10, %s31_s10   ;;  %s1581_s9 = sphi %s1650_s9, %s2079_s9   ;;  %s1577_s30 = sphi %s1648_s30, %s2078_s30   ;;  %s1573_s29 = sphi %s1646_s29, %s2074_s29   ;;  %s1569_s28 = sphi %s1644_s28, %s2077_s28   ;;  %s1565_s27 = sphi %s1642_s27, %s2076_s27  }
   0xe   : > { %2056 = sst [smem:[#allocation17_spill]] %s1573_s29  ;;  %s2045_s12 = sadd.s32 4294967294, %s1585_s10  }
   0xf   : > { %s43_s13 = sadd.s32 1, %s1581_s9  ;;  %s122_s14 = sadd.s32 1, %s1573_s29 }
  0x10   : > { %p45_p0 = scmp.ge.s32.totalorder %s43_s13, 2  ;;  %p129_p1 = scmp.ne.s32.totalorder %s1573_s29, %s1569_s28 }
  0x11   : > { %p130_p2 = scmp.eq.s32.totalorder %s1585_s10, 0  ;;  %p135_p3 = scmp.ne.s32.totalorder %s1569_s28, %s1565_s27 }
  0x12   : > { %s2081_s13 = smov (%p45_p0, %s43_s13), 0  ;;  %p136_p5 = scmp.eq.s32.totalorder %s1673_s11, 0 }
  0x13   : > { %2057 = sst [smem:[#allocation18_spill]] %s2081_s13  ;;  %p1685_p4 = por %p130_p2, %p129_p1 }
  0x14   : > { %s117_s16 = ssub.s32 %s1581_s9, %s2081_s13  ;;  %p217_p6 = scmp.eq.s32.totalorder %s1673_s11, 1 }
  0x15   : > { %p120_p7 = scmp.eq.s32.totalorder %s117_s16, 0  ;;  %p1693_p8 = por %p136_p5, %p135_p3 }
  0x16   : > { %p1697_p9 = por %p217_p6, %p129_p1  ;;  %p223_p10 = scmp.eq.s32.totalorder %s2045_s12, 1 }
  0x17   : > { %s1704_s19 = scalar_select %p120_p7, %s1573_s29, %s122_s14  }
  0x18   : > { %s2060_s18 = scalar_select %p1697_p9, 1, 0 }
  0x19   : > { %2062 = sst [smem:[#allocation20_spill]] %s1704_s19  ;;  %p1706_p11 = por %p223_p10, %p135_p3 }
  0x1a   : > { %2061 = sst [smem:[#allocation19_spill]] %s2060_s18  ;;  %p1192_p12 = scmp.ge.s32.totalorder %s1585_s10, 2 }
  0x1b   : > { %s2063_s20 = scalar_select %p1706_p11, 1, 0 }
  0x1c   : > { %p1286_p13 = scmp.lt.s32.totalorder %s1585_s10, 2  ;;  %s315_s21 = sand.u32 1, %s1573_s29  }
  0x1d   : > { %2064 = sst [smem:[#allocation21_spill]] %s2063_s20  ;;  %s337_s22 = sand.u32 1, %s1585_s10  }
  0x1e   : > { %s1196_s23 = sshll.u32 %s315_s21, 4  ;;  %p1716_p0 = pnand %p1286_p13, %p1685_p4 }
  0x1f   : > { %s1249_s25 = sshll.u32 %s1581_s9, 4  ;;  %s2066_s4 = sld [smem:[#allocation22_spill]] }
  0x20   : > { %s341_s13 = scalar_lea.vmem [#allocation5], %s1196_s23  ;;  %s338_s29 = scalar_lea.sflag [#allocation6], %s337_s22 }
  0x21   : > { %s352_s19 = sshll.u32 %s341_s13, 4  ;;  %s370_s27 = scalar_lea.hbm %s2041_s5, %s1249_s25  ;;  %s353_s19 = int_to_ptr.vmem [resolvable:$true] %s352_s19 }
  0x22   : > { %p1202_p1 = scmp.ge.s32.totalorder %s1585_s10, 1  ;;  %p379_p2 = scmp.lt.s32.totalorder %s1585_s10, 3 }
  0x23   : > { %s1193_s26 = sshll.u32 %s315_s21, 6  ;;  %s1248_s14 = sshll.u32 %s1581_s9, 6 }
  0x24   : > { %p1731_p3 = pnand %p1202_p1, %p379_p2  ;;  %s319_s8 = scalar_lea.vmem [#allocation2], %s1193_s26 }
  0x25   : > { %s348_s16 = scalar_lea.hbm %s2066_s4, %s1249_s25  ;;  %s326_s4 = scalar_lea.hbm %s2039_s3, %s1248_s14 }
  0x26   : > { %s350_s12 = sshll.u32 %s348_s16, 4  ;;  %s328_s22 = sshll.u32 %s326_s4, 4  ;;  %s351_s12 = int_to_ptr.hbm [resolvable:$true] %s350_s12  ;;  %s329_s22 = int_to_ptr.hbm [resolvable:$true] %s328_s22 }
  0x27   : > { %1272 = dma.hbm_to_vmem [thread:$0]  (!%p1716_p0), %s351_s12, 256, %s353_s19, %s338_s29  }
  0x28   : > { %s330_s12 = sshll.u32 %s319_s8, 4  ;;  %s316_s19 = scalar_lea.sflag [#allocation3], %s315_s21  ;;  %s331_s12 = int_to_ptr.vmem [resolvable:$true] %s330_s12 }
  0x29   : > { %1269 = dma.hbm_to_vmem [thread:$0]  (!%p1716_p0), %s329_s22, 1024, %s331_s12, %s316_s19  }
  0x2a   : > { %s372_s20 = sshll.u32 %s370_s27, 4  ;;  %s363_s25 = scalar_lea.vmem [#allocation7], %s1196_s23  ;;  %s373_s20 = int_to_ptr.hbm [resolvable:$true] %s372_s20 }
  0x2b   : > { %s374_s15 = sshll.u32 %s363_s25, 4  ;;  %383 = sbr.rel (%p1731_p3) target bundleno = 321 (0x141), region = 44  ;;  %s375_s15 = int_to_ptr.vmem [resolvable:$true] %s374_s15 }
  0x2c   : > { %1275 = dma.hbm_to_vmem [thread:$0]  (!%p1716_p0), %s373_s20, 256, %s375_s15, %s338_s29  }
  0x2d   : > { %s1746_s4 = sand.u32 (!%p1731_p3), 1, %s1569_s28  }
  0x2e   : > { %s1749_s8 = sshll.u32 (!%p1731_p3), %s1746_s4, 6  ;;  %s386_s21 = scalar_lea.sflag (!%p1731_p3), [#allocation3], %s1746_s4 }
  0x2f   : > { %s1753_s27 = scalar_lea.vmem (!%p1731_p3), [#allocation2], %s1749_s8 }
  0x30   : > { %1548 = dma.done.wait (%p1693_p8), %s386_s21, 1024  }
  0x31   : > { %1550 = vsyncadd (%p1693_p8), %s386_s21, 4294966272  ;;  %s395_s29 = sand.u32 1, %s1673_s11   ;;  %s1204_s18 = sshll.u32 %s1746_s4, 4 }
  0x32   : > { %s396_s23 = scalar_lea.sflag [#allocation6], %s395_s29  ;;  %s399_s24 = scalar_lea.vmem [#allocation5], %s1204_s18 }
  0x33   : > { %1552 = dma.done.wait (%p1693_p8), %s396_s23, 512  }
  0x34   : > { %1554 = vsyncadd (%p1693_p8), %s396_s23, 4294966784  ;;  %p470_p4 = scmp.lt.s32.totalorder %s1577_s30, 1  ;;  %v1587_v0 = vmov 0   ;;  %v1775_v2 = vld [vmem:[%s399_s24 + $0x8] sm:$0xff]  ;;  %s1588_s17 = smov 64   ;;  %v1783_v4 = vld [vmem:[%s1753_s27] sm:$0xff] }
  0x35   : > { %1346 = vset.pattern.permute.xlu0 %v1587_v0  ;;  %857 = vrot.lane.b32.xlu1 %v1775_v2, %s1588_s17  ;;  %v1779_v3 = vld [vmem:[%s1753_s27 + $0x8] sm:$0xff]  ;;  %v1785_v5 = vld [vmem:[%s399_s24] sm:$0xff]  ;;  %v1793_v7 = vld [vmem:[%s1753_s27 + $0x18] sm:$0xff]  ;;  %v1589_v26 = vmov 683565275   ;;  %s409_s20 = scalar_lea.vmem [#allocation7], %s1204_s18 }
  0x36   : > { %s471_s26 = scalar_select %p470_p4, %s1577_s30, 1  ;;  %820 = vrot.lane.b32.xlu2 %v1779_v3, %s1588_s17  ;;  %v1790_v6 = vld [vmem:[%s1753_s27 + $0x20] sm:$0xff]  ;;  %v1798_v8 = vld [vmem:[%s1753_s27 + $0x38] sm:$0xff]  ;;  %v1801_v9 = vld [vmem:[%s1753_s27 + $0x30] sm:$0xff]  ;;  %v1590_v28 = vmov 2475754826  }
  0x37   : > { %v1806_v10 = vld [vmem:[%s1753_s27 + $0x10] sm:$0xff]  ;;  %v1810_v11 = vld [vmem:[%s1753_s27 + $0x28] sm:$0xff]  ;;  %v1347_v12 = vld [vmem:[%s2037_s1] ss:$0 sm:$0xff]  ;;  %v1591_v31 = vmov 2131351028  }
  0x38   : > { %s1209_s14 = sshll.u32 %s471_s26, 3  ;;  %v1592_v34 = vmov 2102212464   ;;  %v1593_v37 = vmov 920167782   ;;  %s1878_s25 = scalar_lea.vmem [#allocation11], %s1749_s8 }
  0x39   : > { %s476_s22 = scalar_lea.vmem %s2036_s0, %s1209_s14  ;;  %v1594_v40 = vmov 1326507024   ;;  %s1896_s27 = scalar_lea.vmem [#allocation9], %s1749_s8 }
  0x3a   : > { %v477_v1 = vld [vmem:[%s476_s22] sm:$0xff]  ;;  %s1904_s18 = sshll.u32 %s1577_s30, 6  ;;  %s1908_s23 = scalar_lea.vmem [#allocation8], %s1749_s8 }
  0x3b   : > { %482 = vperm.xlu0 %1346, %v477_v1   ;;  %s933_s24 = sshll.u32 %s1908_s23, 4  ;;  %s950_s26 = scalar_lea.hbm %s2043_s7, %s1904_s18  ;;  %s1921_s24 = int_to_ptr.vmem [resolvable:$true] %s933_s24 }
  0x3c   : > { %s951_s14 = sshll.u32 %s1896_s27, 4  ;;  %s932_s22 = scalar_lea.hbm %s2042_s6, %s1904_s18  ;;  %s952_s14 = int_to_ptr.vmem [resolvable:$true] %s951_s14 }
  0x3d   : > { %811 = vrot.lane.b32.xlu1 %v1783_v4, %s1588_s17  ;;  %s1941_s21 = sshll.u32 %s932_s22, 4  ;;  %s969_s8 = sshll.u32 %s1878_s25, 4  ;;  %s936_s21 = int_to_ptr.hbm [resolvable:$true] %s1941_s21  ;;  %s1953_s8 = int_to_ptr.vmem [resolvable:$true] %s969_s8 }
  0x3e   : > { %832 = vrot.lane.b32.xlu2 %v1806_v10, %s1588_s17  ;;  %s1459_s22 = scalar_lea.hbm %s2043_s7, 128 }
  0x43   : > { %805 = vrot.lane.b32.xlu0 %v1785_v5, %s1588_s17 }
  0x45   : > { %863 = vrot.lane.b32.xlu1 %v1790_v6, %s1588_s17 }
  0x46   : > { %875 = vrot.lane.b32.xlu2 %v1810_v11, %s1588_s17 }
  0x4b   : > { %844 = vrot.lane.b32.xlu0 %v1793_v7, %s1588_s17 }
  0x4d   : > { %899 = vrot.lane.b32.xlu1 %v1798_v8, %s1588_s17 }
  0x53   : > { %887 = vrot.lane.b32.xlu0 %v1801_v9, %s1588_s17  ;;  %s1933_s17 = sshll.u32 %s950_s26, 4  ;;  %s954_s17 = int_to_ptr.hbm [resolvable:$true] %s1933_s17 }
  0x54   : > { %s1453_s26 = sshra.s32 %s954_s17, 4  ;;  %s1454_s26 = int_to_ptr.hbm [resolvable:$true] %s1453_s26 }
  0x55   : > { %s1455_s13 = scalar_lea.hbm %s1454_s26, 64  ;;  %p1460_p8 = scmp.lt.s32.totalorder %s1454_s26, %s2043_s7 }
  0x56   : > { %p1456_p5 = scmp.ne.s32.totalorder %s1454_s26, %s1455_s13  ;;  %p1461_p10 = scmp.lt.s32.totalorder %s1459_s22, %s1455_s13 }
  0x58   : > { %p1457_p6 = pnand %p1456_p5, %p1697_p9  ;;  %p1462_p13 = por %p1461_p10, %p1460_p8 }
  0x5a   : > { %p1458_p7 = pneg %p1457_p6 }
  0x5c   : > { %p1463_p0 = pnand %p1462_p13, %p1458_p7 }
  0xad   : > { %v483_v13 = vpop.permute.xlu0 %482 }
  0xae   : > { %v1816_v14 = vmul.f32 %v1347_v12, %v483_v13 }
  0xb0   : > { %v492_v15 = vand.u32 2139095040, %v1816_v14  ;;  %v489_v18 = vand.u32 2147483647, %v1816_v14  ;;  %vm491_vm12 = vcmp.lt.s32.totalorder %v1816_v14, 0 }
  0xb2   : > { %v493_v16 = vshrl.u32 %v492_v15, 23  ;;  %v496_v20 = vand.u32 8388607, %v489_v18  ;;  %vm490_vm13 = vcmp.le.f32.partialorder %v489_v18, 0.7853982  ;;  %v821_v18 = vpop.permute.xlu2 %820 }
  0xb4   : > { %v1210_v17 = vadd.s32 4294967169, %v493_v16  ;;  %v497_v24 = vor.u32 8388608, %v496_v20 }
  0xb6   : > { %v499_v19 = vadd.s32 1, %v1210_v17  ;;  %v1833_v47 = vshll.u32 %v497_v24, 8 }
  0xb8   : > { %vm500_vm0 = vcmp.gt.s32.totalorder %v499_v19, 0  ;;  %v538_v56 = vand.u32 65535, %v1833_v47  ;;  %v539_v57 = vshrl.u32 %v1833_v47, 16 }
  0xb9   : > { %v501_v21 = vsel %vm500_vm0, %v499_v19, 0 }
  0xba   : > { %v503_v22 = vand.u32 31, %v501_v21  ;;  %v1824_v25 = vshrl.u32 %v501_v21, 5 }
  0xbc   : > { %v1822_v23 = vsub.s32 32, %v503_v22  ;;  %v506_v27 = vshll.u32 %v1589_v26, %v503_v22  ;;  %v509_v29 = vshll.u32 %v1590_v28, %v503_v22  ;;  %v512_v33 = vshll.u32 %v1591_v31, %v503_v22 }
  0xbd   : > { %v515_v36 = vshll.u32 %v1592_v34, %v503_v22  ;;  %v518_v39 = vshll.u32 %v1593_v37, %v503_v22  ;;  %vm521_vm1 = vcmp.lt.s32.totalorder %v1824_v25, 1  ;;  %vm524_vm2 = vcmp.lt.s32.totalorder %v1824_v25, 4 }
  0xbe   : > { %v507_v30 = vshrl.u32 %v1590_v28, %v1822_v23  ;;  %v510_v32 = vshrl.u32 %v1591_v31, %v1822_v23  ;;  %v513_v35 = vshrl.u32 %v1592_v34, %v1822_v23  ;;  %v516_v38 = vshrl.u32 %v1593_v37, %v1822_v23 }
  0xbf   : > { %v519_v41 = vshrl.u32 %v1594_v40, %v1822_v23  ;;  %vm523_vm3 = vcmp.lt.s32.totalorder %v1824_v25, 3  ;;  %vm522_vm4 = vcmp.lt.s32.totalorder %v1824_v25, 2  ;;  %v505_v34 = vshrl.u32 %v1589_v26, %v1822_v23 }
  0xc0   : > { %v508_v42 = vor.u32 %v507_v30, %v506_v27  ;;  %v511_v43 = vor.u32 %v510_v32, %v509_v29  ;;  %v514_v44 = vor.u32 %v513_v35, %v512_v33  ;;  %v517_v45 = vor.u32 %v516_v38, %v515_v36 }
  0xc1   : > { %v520_v46 = vor.u32 %v519_v41, %v518_v39 }
  0xc2   : > { %v529_v48 = vsel %vm521_vm1, %v508_v42, %v511_v43  ;;  %v533_v49 = vsel %vm521_vm1, %v511_v43, %v514_v44  ;;  %v530_v50 = vsel %vm524_vm2, %v517_v45, 920167782  ;;  %v526_v31 = vsel %vm524_vm2, %v514_v44, 2102212464 }
  0xc3   : > { %v534_v51 = vsel %vm524_vm2, %v520_v46, 1326507024  ;;  %v531_v52 = vsel %vm523_vm3, %v514_v44, %v530_v50  ;;  %v525_v40 = vsel %vm521_vm1, %v505_v34, %v508_v42  ;;  %v527_v41 = vsel %vm523_vm3, %v511_v43, %v526_v31 }
  0xc4   : > { %v535_v53 = vsel %vm523_vm3, %v517_v45, %v534_v51  ;;  %v532_v54 = vsel %vm522_vm4, %v529_v48, %v531_v52  ;;  %v528_v23 = vsel %vm522_vm4, %v525_v40, %v527_v41 }
  0xc5   : > { %v536_v55 = vsel %vm522_vm4, %v533_v49, %v535_v53  ;;  %v562_v60 = vand.u32 65535, %v532_v54  ;;  %v563_v61 = vshrl.u32 %v532_v54, 16  ;;  %v582_v51 = vmul.u32 %v1833_v47, %v528_v23  ;;  %v855_v23 = vld [vmem:[%s409_s20 + $0x8] sm:$0xff] }
  0xc6   : > { %v540_v58 = vand.u32 65535, %v536_v55  ;;  %v541_v59 = vshrl.u32 %v536_v55, 16  ;;  %1227 = vst [vmem:[%s1878_s25 + $0x20] sm:$0xff] %v855_v23  ;;  %vm632_vm4 = vweird.f32 %v1816_v14 }
  0xc7   : > { %v565_v1 = vmul.u32 %v563_v61, %v538_v56  ;;  %v566_v12 = vmul.u32 %v562_v60, %v539_v57  ;;  %v564_v17 = vmul.u32 %v562_v60, %v538_v56  ;;  %v567_v22 = vmul.u32 %v563_v61, %v539_v57  ;;  %1230 = vst [vmem:[%s1878_s25 + $0x28] sm:$0xff] %v855_v23 }
  0xc8   : > { %v543_v62 = vmul.u32 %v541_v59, %v538_v56  ;;  %v544_v63 = vmul.u32 %v540_v58, %v539_v57  ;;  %v542_v13 = vmul.u32 %v540_v58, %v538_v56  ;;  %v545_v16 = vmul.u32 %v541_v59, %v539_v57  ;;  %1233 = vst [vmem:[%s1878_s25 + $0x30] sm:$0xff] %v855_v23 }
  0xc9   : > { %v568_v19 = vshll.u32 %v565_v1, 16  ;;  %v570_v27 = vshll.u32 %v566_v12, 16  ;;  %v569_v38 = vshrl.u32 %v565_v1, 16  ;;  %v571_v46 = vshrl.u32 %v566_v12, 16  ;;  %1236 = vst [vmem:[%s1878_s25 + $0x38] sm:$0xff] %v855_v23 }
  0xca   : > { %v546_v15 = vshll.u32 %v543_v62, 16  ;;  %v548_v20 = vshll.u32 %v544_v63, 16  ;;  %v547_v35 = vshrl.u32 %v543_v62, 16  ;;  %v549_v44 = vshrl.u32 %v544_v63, 16 }
  0xcb   : > { %vm572_vm6 = vc.u32 %v564_v17, %v568_v19  ;;  %v574_v28 = vadd.s32 %v568_v19, %v564_v17 }
  0xcc   : > { %vm550_vm5 = vc.u32 %v542_v13, %v546_v15  ;;  %v552_v21 = vadd.s32 %v546_v15, %v542_v13  ;;  %v573_v30 = vsel %vm572_vm6, 1, %v1587_v0 }
  0xcd   : > { %v551_v24 = vsel %vm550_vm5, 1, %v1587_v0  ;;  %v575_v33 = vadd.s32 %v573_v30, %v567_v22  ;;  %vm576_vm8 = vc.u32 %v574_v28, %v570_v27  ;;  %v578_v50 = vadd.s32 %v574_v28, %v570_v27  ;;  %v858_v28 = vpop.permute.xlu1 %857 }
  0xce   : > { %v553_v29 = vadd.s32 %v551_v24, %v545_v16  ;;  %vm554_vm7 = vc.u32 %v552_v21, %v548_v20  ;;  %v577_v37 = vsel %vm576_vm8, 1, %v1587_v0 }
  0xcf   : > { %v555_v32 = vsel %vm554_vm7, 1, %v1587_v0  ;;  %v579_v39 = vadd.s32 %v577_v37, %v575_v33 }
  0xd0   : > { %v557_v36 = vadd.s32 %v555_v32, %v553_v29 }
  0xd1   : > { %v580_v48 = vadd.s32 %v579_v39, %v569_v38 }
  0xd2   : > { %v558_v45 = vadd.s32 %v557_v36, %v547_v35 }
  0xd3   : > { %v581_v26 = vadd.s32 %v580_v48, %v571_v46  ;;  %v806_v46 = vpop.permute.xlu0 %805 }
  0xd4   : > { %v559_v49 = vadd.s32 %v558_v45, %v549_v44  ;;  %v803_v45 = vld [vmem:[%s409_s20] sm:$0xff]  ;;  %s2068_s20 = sld [smem:[#allocation23_spill]] }
  0xd5   : > { %v585_v0 = vadd.s32 1, %v581_v26  ;;  %v812_v44 = vpop.permute.xlu1 %811  ;;  %817 = vst [vmem:[%s1878_s25] sm:$0xff] %v803_v45 }
  0xd6   : > { %vm584_vm9 = vc.u32 %v559_v49, %v578_v50  ;;  %v583_v25 = vadd.s32 %v578_v50, %v559_v49  ;;  %1218 = vst [vmem:[%s1878_s25 + $0x8] sm:$0xff] %v803_v45 }
  0xd7   : > { %v586_v52 = vsel %vm584_vm9, %v585_v0, %v581_v26  ;;  %1221 = vst [vmem:[%s1878_s25 + $0x10] sm:$0xff] %v803_v45 }
  0xd8   : > { %v587_v53 = vadd.s32 %v586_v52, %v582_v51  ;;  %1224 = vst [vmem:[%s1878_s25 + $0x18] sm:$0xff] %v803_v45  ;;  %v1348_v52 = vld [vmem:[%s2038_s2] ss:$0 sm:$0xff] }
  0xda   : > { %v588_v42 = vadd.s32 536870912, %v587_v53  ;;  %s968_s15 = scalar_lea.hbm %s2068_s20, %s1904_s18  ;;  %s1957_s18 = scalar_lea.sflag [#allocation10], %s395_s29 }
  0xdb   : > { %s1944_s30 = sshll.u32 %s968_s15, 4  ;;  %s972_s30 = int_to_ptr.hbm [resolvable:$true] %s1944_s30 }
  0xdc   : > { %v589_v54 = vshrl.u32 %v588_v42, 30 }
  0xde   : > { %v590_v55 = vshll.u32 %v589_v54, 30  ;;  %v613_v22 = vsub.s32 4, %v589_v54 }
  0xe0   : > { %v591_v43 = vsub.s32 %v587_v53, %v590_v55  ;;  %v614_v31 = vsel %vm491_vm12, %v613_v22, %v589_v54 }
  0xe1   : > { %v616_v34 = vsel %vm490_vm13, 0, %v614_v31 }
  0xe2   : > { %vm592_vm10 = vcmp.lt.s32.totalorder %v591_v43, 0  ;;  %v593_v56 = vsub.s32 0, %v591_v43  ;;  %v787_v39 = vadd.s32 3, %v616_v34  ;;  %v633_v50 = vand.u32 3, %v616_v34 }
  0xe4   : > { %v594_v57 = vsel %vm592_vm10, %v593_v56, %v591_v43  ;;  %v788_v26 = vand.u32 3, %v787_v39  ;;  %vm634_vm14 = vcmp.lt.s32.totalorder %v633_v50, 2  ;;  %vm635_vm15 = vcmp.eq.s32.totalorder %v633_v50, 0 }
  0xe5   : > { %v595_v58 = vclz %v594_v57  ;;  %vm638_vm0 = vcmp.eq.s32.totalorder %v633_v50, 2 }
  0xe6   : > { %vm789_vm1 = vcmp.lt.s32.totalorder %v788_v26, 2  ;;  %vm790_vm2 = vcmp.eq.s32.totalorder %v788_v26, 0  ;;  %vm793_vm3 = vcmp.eq.s32.totalorder %v788_v26, 2 }
  0xe7   : > { %v1211_v59 = vadd.s32 4294967294, %v595_v58  ;;  %v833_v58 = vpop.permute.xlu2 %832 }
  0xe9   : > { %vm1212_vm11 = vcmp.lt.s32.totalorder %v1211_v59, 0 }
  0xea   : > { %v598_v60 = vsel %vm1212_vm11, 0, %v1211_v59 }
  0xeb   : > { %v599_v61 = vsub.s32 32, %v598_v60  ;;  %v603_v62 = vsub.s32 4294967266, %v598_v60  ;;  %v600_v63 = vshll.u32 %v591_v43, %v598_v60 }
  0xed   : > { %v601_v1 = vshrl.u32 %v583_v25, %v599_v61  ;;  %v604_v12 = vadd.s32 127, %v603_v62  ;;  %v864_v25 = vpop.permute.xlu1 %863  ;;  %v845_v62 = vpop.permute.xlu0 %844 }
  0xef   : > { %v602_v47 = vor.u32 %v601_v1, %v600_v63  ;;  %v605_v13 = vshll.u32 %v604_v12, 23 }
  0xf1   : > { %v606_v15 = vor.u32 4788187, %v605_v13  ;;  %v609_v17 = vcvt.s32.f32 %v602_v47 }
  0xf3   : > { %v607_v16 = vand.u32 2147483647, %v606_v15 }
  0xf5   : > { %v610_v19 = vmul.f32 %v609_v17, %v607_v16  ;;  %v900_v22 = vpop.permute.xlu1 %899 }
  0xf7   : > { %v611_v20 = vxor.u32 2147483648, %v610_v19 }
  0xf9   : > { %v612_v21 = vsel %vm491_vm12, %v611_v20, %v610_v19 }
  0xfa   : > { %v615_v24 = vsel %vm490_vm13, %v1816_v14, %v612_v21  ;;  %v876_v21 = vpop.permute.xlu2 %875 }
  0xfb   : > { %v617_v27 = vmul.f32 %v615_v24, %v615_v24 }
  0xfd   : > { %v618_v29 = vmul.f32 -0.001358992, %v617_v27  ;;  %v625_v30 = vmul.f32 -0.00019511016, %v617_v27 }
  0xff   : > { %v619_v32 = vadd.f32 0.041655596, %v618_v29  ;;  %v626_v33 = vadd.f32 0.008332121, %v625_v30 }
 0x101   : > { %v620_v35 = vmul.f32 %v619_v32, %v617_v27  ;;  %v627_v36 = vmul.f32 %v626_v33, %v617_v27 }
 0x103   : > { %v621_v37 = vadd.f32 -0.4999988, %v620_v35  ;;  %v628_v38 = vadd.f32 -0.16666654, %v627_v36 }
 0x105   : > { %v622_v40 = vmul.f32 %v621_v37, %v617_v27  ;;  %v629_v41 = vmul.f32 %v628_v38, %v617_v27  ;;  %v888_v27 = vpop.permute.xlu0 %887 }
 0x107   : > { %v623_v48 = vadd.f32 1.0, %v622_v40  ;;  %v630_v49 = vadd.f32 1.0, %v629_v41 }
 0x109   : > { %v631_v0 = vmul.f32 %v630_v49, %v615_v24  ;;  %v639_v51 = vxor.u32 2147483648, %v623_v48 }
 0x10b   : > { %v636_v53 = vxor.u32 2147483648, %v631_v0  ;;  %v640_v54 = vsel %vm638_vm0, %v639_v51, %v631_v0  ;;  %v795_v43 = vsel %vm793_vm3, %v639_v51, %v631_v0 }
 0x10d   : > { %v637_v42 = vsel %vm635_vm15, %v623_v48, %v636_v53  ;;  %v792_v55 = vsel %vm790_vm2, %v623_v48, %v636_v53 }
 0x10e   : > { %v641_v56 = vsel %vm634_vm14, %v637_v42, %v640_v54  ;;  %v796_v57 = vsel %vm789_vm1, %v792_v55, %v795_v43 }
 0x10f   : > { %v642_v59 = vsel %vm632_vm4, nan, %v641_v56  ;;  %v797_v60 = vsel %vm632_vm4, nan, %v796_v57 }
 0x110   : > { %v801_v61 = vmul.f32 %v1348_v52, %v797_v60  ;;  %v856_v63 = vmul.f32 %v1775_v2, %v642_v59  ;;  %v819_v15 = vmul.f32 %v1779_v3, %v642_v59  ;;  %v810_v14 = vmul.f32 %v1783_v4, %v642_v59 }
 0x111   : > { %v804_v2 = vmul.f32 %v1785_v5, %v642_v59  ;;  %v831_v24 = vmul.f32 %v1806_v10, %v642_v59  ;;  %v843_v30 = vmul.f32 %v1793_v7, %v642_v59  ;;  %v874_v32 = vmul.f32 %v1810_v11, %v642_v59 }
 0x112   : > { %v859_v1 = vmul.f32 %v858_v28, %v801_v61  ;;  %v822_v12 = vmul.f32 %v821_v18, %v801_v61  ;;  %v813_v47 = vmul.f32 %v812_v44, %v801_v61  ;;  %v807_v16 = vmul.f32 %v806_v46, %v801_v61 }
 0x113   : > { %v834_v3 = vmul.f32 %v833_v58, %v801_v61  ;;  %v865_v4 = vmul.f32 %v864_v25, %v801_v61  ;;  %v846_v5 = vmul.f32 %v845_v62, %v801_v61  ;;  %v862_v28 = vmul.f32 %v1790_v6, %v642_v59 }
 0x114   : > { %v860_v13 = vadd.f32 %v859_v1, %v856_v63  ;;  %v823_v17 = vadd.f32 %v822_v12, %v819_v15  ;;  %v814_v19 = vadd.f32 %v813_v47, %v810_v14  ;;  %v808_v20 = vadd.f32 %v807_v16, %v804_v2 }
 0x115   : > { %v877_v29 = vmul.f32 %v876_v21, %v801_v61  ;;  %v835_v10 = vadd.f32 %v834_v3, %v831_v24  ;;  %v901_v31 = vmul.f32 %v900_v22, %v801_v61  ;;  %v866_v6 = vadd.f32 %v865_v4, %v862_v28 }
 0x116   : > { %1226 = vst [vmem:[%s1896_s27 + $0x20] sm:$0xff] %v860_v13  ;;  %v889_v33 = vmul.f32 %v888_v27, %v801_v61  ;;  %v847_v34 = vadd.f32 %v846_v5, %v843_v30  ;;  %v898_v7 = vmul.f32 %v1798_v8, %v642_v59  ;;  %v886_v35 = vmul.f32 %v1801_v9, %v642_v59 }
 0x117   : > { %1229 = vst [vmem:[%s1896_s27 + $0x28] sm:$0xff] %v860_v13  ;;  %v878_v11 = vadd.f32 %v877_v29, %v874_v32 }
 0x118   : > { %1232 = vst [vmem:[%s1896_s27 + $0x30] sm:$0xff] %v860_v13  ;;  %v902_v8 = vadd.f32 %v901_v31, %v898_v7  ;;  %v890_v36 = vadd.f32 %v889_v33, %v886_v35 }
 0x119   : > { %1235 = vst [vmem:[%s1896_s27 + $0x38] sm:$0xff] %v860_v13 }
 0x11a   : > { %1216 = vst [vmem:[%s1908_s23 + $0x8] sm:$0xff] %v823_v17 }
 0x11b   : > { %815 = vst [vmem:[%s1908_s23] sm:$0xff] %v814_v19 }
 0x11c   : > { %816 = vst [vmem:[%s1896_s27] sm:$0xff] %v808_v20 }
 0x11d   : > { %1217 = vst [vmem:[%s1896_s27 + $0x8] sm:$0xff] %v808_v20 }
 0x11e   : > { %1220 = vst [vmem:[%s1896_s27 + $0x10] sm:$0xff] %v808_v20 }
 0x11f   : > { %1223 = vst [vmem:[%s1896_s27 + $0x18] sm:$0xff] %v808_v20 }
 0x120   : > { %1219 = vst [vmem:[%s1908_s23 + $0x10] sm:$0xff] %v835_v10 }
 0x121   : > { %1225 = vst [vmem:[%s1908_s23 + $0x20] sm:$0xff] %v866_v6 }
 0x122   : > { %1222 = vst [vmem:[%s1908_s23 + $0x18] sm:$0xff] %v847_v34 }
 0x123   : > { %1228 = vst [vmem:[%s1908_s23 + $0x28] sm:$0xff] %v878_v11 }
 0x124   : > { %1234 = vst [vmem:[%s1908_s23 + $0x38] sm:$0xff] %v902_v8 }
 0x125   : > { %1231 = vst [vmem:[%s1908_s23 + $0x30] sm:$0xff] %v890_v36 }
 0x126   : > { %1466 = shalt.err (!%p1463_p0)
}
 0x127   : > { %s1595_s11 = smov 128   ;;  %s1596_s29 = smov 8  }
 0x128   : > { %1261 = dma.vmem_to_hbm [thread:$0]  (%p1697_p9), %s952_s14, 1024, %s954_s17, %s1957_s18, %s1595_s11, %s1595_s11, %s1596_s29  }
 0x129   : > { %s910_s23 = scalar_lea.sflag [#allocation4], %s1746_s4  ;;  %s1481_s15 = sshra.s32 %s936_s21, 4  ;;  %s1482_s15 = int_to_ptr.hbm [resolvable:$true] %s1481_s15 }
 0x12a   : > { %s1483_s26 = scalar_lea.hbm %s1482_s15, 64  ;;  %s1487_s16 = scalar_lea.hbm %s2042_s6, 128 }
 0x12b   : > { %p1484_p1 = scmp.ne.s32.totalorder %s1482_s15, %s1483_s26  ;;  %p1488_p4 = scmp.lt.s32.totalorder %s1482_s15, %s2042_s6 }
 0x12c   : > { %p1489_p5 = scmp.lt.s32.totalorder %s1487_s16, %s1483_s26 }
 0x12d   : > { %p1485_p2 = pnand %p1484_p1, %p1697_p9 }
 0x12e   : > { %p1490_p6 = por %p1489_p5, %p1488_p4 }
 0x12f   : > { %p1486_p3 = pneg %p1485_p2 }
 0x131   : > { %p1491_p7 = pnand %p1490_p6, %p1486_p3 }
 0x133   : > { %1494 = shalt.err (!%p1491_p7)
}
 0x134   : > { %1260 = dma.vmem_to_hbm [thread:$0]  (%p1697_p9), %s1921_s24, 1024, %s936_s21, %s910_s23, %s1595_s11, %s1595_s11, %s1596_s29  }
 0x135   : > { %s1509_s4 = sshra.s32 %s972_s30, 4  ;;  %s1515_s15 = scalar_lea.hbm %s2068_s20, 128  ;;  %s1510_s4 = int_to_ptr.hbm [resolvable:$true] %s1509_s4 }
 0x136   : > { %s1511_s14 = scalar_lea.hbm %s1510_s4, 64  ;;  %p1516_p0 = scmp.lt.s32.totalorder %s1510_s4, %s2068_s20 }
 0x137   : > { %p1512_p8 = scmp.ne.s32.totalorder %s1510_s4, %s1511_s14  ;;  %p1517_p1 = scmp.lt.s32.totalorder %s1515_s15, %s1511_s14 }
 0x139   : > { %p1513_p10 = pnand %p1512_p8, %p1697_p9  ;;  %p1518_p2 = por %p1517_p1, %p1516_p0 }
 0x13b   : > { %p1514_p13 = pneg %p1513_p10 }
 0x13d   : > { %p1519_p3 = pnand %p1518_p2, %p1514_p13 }
 0x13f   : > { %1522 = shalt.err (!%p1519_p3)
}
 0x140   : > { %1262 = dma.vmem_to_hbm [thread:$0]  (%p1697_p9), %s1953_s8, 1024, %s972_s30, %s1957_s18, %s1595_s11, %s1595_s11, %s1596_s29  }
 0x141 PF: > { %s2070_s24 = sld [smem:[#allocation16_spill]]  ;;  %p1277_p4 = pnand %p1192_p12, %p1706_p11 }
 0x143   : > { %p1278_p5 = pneg %p1277_p4 }
 0x147   : > { %s986_s23 = sand.u32 1, %s2070_s24  }
 0x148   : > { %s987_s25 = scalar_lea.sflag [#allocation4], %s986_s23 }
 0x149   : > { %1556 = dma.done.wait (%p1278_p5), %s987_s25, 1024  }
 0x14a   : > { %1558 = vsyncadd (%p1278_p5), %s987_s25, 4294966272  ;;  %s2072_s27 = sadd.s32 4294967294, %s1585_s10  }
 0x14b   : > { %s996_s16 = sand.u32 1, %s2072_s27  }
 0x14c   : > { %s997_s22 = scalar_lea.sflag [#allocation10], %s996_s16 }
 0x14d   : > { %1560 = dma.done.wait (%p1278_p5), %s997_s22, 2048  }
 0x14e   : > { %1562 = vsyncadd (%p1278_p5), %s997_s22, 4294965248  ;;  %s31_s10 = sadd.s32 1, %s1585_s10   ;;  %s2073_s30 = sld [smem:[#allocation17_spill]] }
 0x14f   : > { %p28_p9 = scmp.ge.s32.totalorder %s31_s10, 4   ;;  %s2074_s29 = sld [smem:[#allocation20_spill]] }
 0x150   : > { %s2075_s8 = sld [smem:[#allocation18_spill]]  ;;  %s2076_s27 = smov %s1569_s28 }
 0x152   :  { %30 = sbr.rel (!%p28_p9) target bundleno = 13 (0xd), region = 169 }
 0x154   : > { %s2077_s28 = smov %s2073_s30  ;;  %s2078_s30 = smov %s1581_s9 }
 0x156   : > { %s2079_s9 = smov %s2075_s8 }
 0x157   :  { %1013 = vsyncpa [#allocation3], 1 }
 0x158   :  { %1015 = vsyncpa [#allocation3 + $0x1], 1 }
 0x159   :  { %1016 = vsyncpa [#allocation6], 1 }
 0x15a   :  { %1018 = vsyncpa [#allocation6 + $0x1], 1 }
 0x15b   :  { %1019 = vsyncpa [#allocation4], 1 }
 0x15c   :  { %1021 = vsyncpa [#allocation4 + $0x1], 1 }
 0x15d   :  { %1022 = vsyncpa [#allocation10], 1 }
 0x15e   :  { %1024 = vsyncpa [#allocation10 + $0x1], 1 }

</bundles_post_ra>
